<compile_context>
chip_gen: v5e
topology: v5e:2x2
jax: 0.10.0
libtpu: 0.0.40
codegen_flags: <defaults>
</compile_context>

<pallas_src>
import jax
import jax.numpy as jnp
from jax.experimental import pallas as pl
from jax.experimental.pallas import tpu as pltpu

NUM_TRUNK = 4
D = 16          # feature width
N_ACT = 6       # action logits
HEAD_OUT = 8    # 6 action + 1 value + 1 pad column (single store)


def _round_up(x, m):
    return ((x + m - 1) // m) * m


def policy_kernel(x_ref, wt_ref, bt_ref, wh_ref, bh_ref, out_ref):
    """One batch tile: x (TB,16) -> out (TB,8) = [action(6) | value(1) | pad(1)]."""
    h = x_ref[...]
    # 4 x (Linear + ReLU); static Python loop unrolls at trace time.
    for layer in range(NUM_TRUNK):
        w = wt_ref[layer]            # (16, 16), already (in, out)
        b = bt_ref[layer]            # (1, 16)
        h = jnp.maximum(
            jnp.dot(h, w, preferred_element_type=jnp.float32) + b, 0.0)
    # Fused heads: single MXU push + single store.
    out_ref[...] = (jnp.dot(h, wh_ref[...], preferred_element_type=jnp.float32)
                    + bh_ref[...]).astype(out_ref.dtype)


def init_params(key):
    """Deterministic synthetic params in PyTorch convention: W (out,in), b (out,)."""
    shapes = [
        (16, 16), (16,),   # linear 1
        (16, 16), (16,),   # linear 2
        (16, 16), (16,),   # linear 3
        (16, 16), (16,),   # linear 4
        (6, 16), (6,),     # action head
        (1, 16), (1,),     # value head
    ]
    keys = jax.random.split(key, len(shapes))
    params = []
    for k, s in zip(keys, shapes):
        fan_in = s[-1] if len(s) == 2 else 16
        bound = 1.0 / jnp.sqrt(fan_in)
        params.append(jax.random.uniform(k, s, jnp.float32, -bound, bound))
    return params


def pack_params(params):
    """One-time packing: transpose to (in,out), merge heads, stack trunk layers."""
    (w1, b1, w2, b2, w3, b3, w4, b4, wa, ba, wv, bv) = params
    w_trunk = jnp.stack([w1.T, w2.T, w3.T, w4.T], axis=0)          # (4, 16, 16)
    b_trunk = jnp.stack([b1, b2, b3, b4], axis=0)[:, None, :]      # (4, 1, 16)
    w_head = jnp.zeros((D, HEAD_OUT), jnp.float32)
    w_head = w_head.at[:, :N_ACT].set(wa.T).at[:, N_ACT:N_ACT + 1].set(wv.T)
    b_head = jnp.zeros((1, HEAD_OUT), jnp.float32)
    b_head = b_head.at[0, :N_ACT].set(ba).at[0, N_ACT].set(bv[0])
    return w_trunk, b_trunk, w_head, b_head


def policy_forward(state, packed_params, *, max_tile=512):
    """state: [B, 16] f32 -> (action [B, 6], value [B, 1])."""
    w_trunk, b_trunk, w_head, b_head = packed_params
    B = state.shape[0]

    # Batch tile: sublane-aligned, capped so big rollouts pipeline / megacore-shard.
    tile = min(max_tile, _round_up(B, 8))
    b_pad = _round_up(B, tile)
    if b_pad != B:
        state = jnp.pad(state, ((0, b_pad - B), (0, 0)))
    grid = (b_pad // tile,)

    out = pl.pallas_call(
        policy_kernel,
        out_shape=jax.ShapeDtypeStruct((b_pad, HEAD_OUT), jnp.float32),
        grid=grid,
        in_specs=[
            pl.BlockSpec((tile, D), lambda i: (i, 0)),                 # activations: pipelined
            pl.BlockSpec((NUM_TRUNK, D, D), lambda i: (0, 0, 0)),      # trunk weights: resident
            pl.BlockSpec((NUM_TRUNK, 1, D), lambda i: (0, 0, 0)),      # trunk biases: resident
            pl.BlockSpec((D, HEAD_OUT), lambda i: (0, 0)),             # fused head weight
            pl.BlockSpec((1, HEAD_OUT), lambda i: (0, 0)),             # fused head bias
        ],
        out_specs=pl.BlockSpec((tile, HEAD_OUT), lambda i: (i, 0)),
        compiler_params=pltpu.CompilerParams(
            dimension_semantics=("parallel",),
            vmem_limit_bytes=32 << 20),
    )(state, w_trunk, b_trunk, w_head, b_head)

    action = out[:B, :N_ACT]
    value = out[:B, N_ACT:N_ACT + 1]
    return action, value


def policy_forward_ref(state, params):
    (w1, b1, w2, b2, w3, b3, w4, b4, wa, ba, wv, bv) = params
    h = state
    for w, b in ((w1, b1), (w2, b2), (w3, b3), (w4, b4)):
        h = jnp.maximum(h @ w.T + b, 0.0)
    return h @ wa.T + ba, h @ wv.T + bv


if __name__ == "__main__":
    key = jax.random.PRNGKey(0)
    pkey, xkey, xkey2 = jax.random.split(key, 3)
    params = init_params(pkey)
    packed = pack_params(params)   # pre-transpose / pack once, reuse every call

    # Small batch (single grid step).
    B = 8
    state = jax.random.normal(xkey, (B, D), jnp.float32)
    action, value = policy_forward(state, packed)
    jax.block_until_ready((action, value))
    ref_action, ref_value = policy_forward_ref(state, params)
    assert action.shape == (B, N_ACT) and value.shape == (B, 1)
    assert jnp.allclose(action, ref_action, atol=1e-5, rtol=1e-5)
    assert jnp.allclose(value, ref_value, atol=1e-5, rtol=1e-5)

    # Larger ragged batch: exercises the batch grid, tail padding, megacore path.
    B2 = 1000
    state2 = jax.random.normal(xkey2, (B2, D), jnp.float32)
    action2, value2 = policy_forward(state2, packed)
    jax.block_until_ready((action2, value2))
    ref_action2, ref_value2 = policy_forward_ref(state2, params)
    assert action2.shape == (B2, N_ACT) and value2.shape == (B2, 1)
    assert jnp.allclose(action2, ref_action2, atol=1e-5, rtol=1e-5)
    assert jnp.allclose(value2, ref_value2, atol=1e-5, rtol=1e-5)

    print("KERNEL_OK")
</pallas_src>

<mosaic_0001>
module attributes {stable_mosaic.version = 11 : i64} {
  func.func @policy_kernel(%arg0: i32, %arg1: memref<8x16xf32, #tpu.memory_space<vmem>>, %arg2: memref<4x16x16xf32, #tpu.memory_space<vmem>>, %arg3: memref<4x1x16xf32, #tpu.memory_space<vmem>>, %arg4: memref<16x8xf32, #tpu.memory_space<vmem>>, %arg5: memref<1x8xf32, #tpu.memory_space<vmem>>, %arg6: memref<8x8xf32, #tpu.memory_space<vmem>>) attributes {dimension_semantics = [#tpu.dimension_semantics<parallel>], iteration_bounds = array<i64: 1>, scalar_prefetch = 0 : i64, scratch_operands = 0 : i64, tpu.core_type = #tpu.core_type<tc>, window_params = [{transform_indices = @transform_0, window_bounds = array<i64: 8, 16>}, {pipeline_mode = #tpu.pipeline_mode<synchronous>, transform_indices = @transform_1, window_bounds = array<i64: 4, 16, 16>}, {pipeline_mode = #tpu.pipeline_mode<synchronous>, transform_indices = @transform_2, window_bounds = array<i64: 4, 1, 16>}, {pipeline_mode = #tpu.pipeline_mode<synchronous>, transform_indices = @transform_3, window_bounds = array<i64: 16, 8>}, {pipeline_mode = #tpu.pipeline_mode<synchronous>, transform_indices = @transform_4, window_bounds = array<i64: 1, 8>}, {transform_indices = @transform_5, window_bounds = array<i64: 8, 8>}]} {
    %c0 = arith.constant 0 : index
    %c0_0 = arith.constant 0 : index
    %0 = vector.load %arg1[%c0, %c0_0] : memref<8x16xf32, #tpu.memory_space<vmem>>, vector<8x16xf32>
    %c0_1 = arith.constant 0 : index
    %c0_2 = arith.constant 0 : index
    %c0_3 = arith.constant 0 : index
    %1 = vector.load %arg2[%c0_1, %c0_2, %c0_3] : memref<4x16x16xf32, #tpu.memory_space<vmem>>, vector<1x16x16xf32>
    %2 = vector.shape_cast %1 : vector<1x16x16xf32> to vector<16x16xf32>
    %c0_4 = arith.constant 0 : index
    %c0_5 = arith.constant 0 : index
    %c0_6 = arith.constant 0 : index
    %3 = vector.load %arg3[%c0_4, %c0_5, %c0_6] : memref<4x1x16xf32, #tpu.memory_space<vmem>>, vector<1x1x16xf32>
    %4 = vector.shape_cast %3 : vector<1x1x16xf32> to vector<1x16xf32>
    %cst = arith.constant dense<0.000000e+00> : vector<8x16xf32>
    %5 = tpu.matmul %0, %2, %cst {dimension_numbers = #tpu.dot_dimension_numbers<[1], [0], [0], [1], [0, 0, 1, 1], [], []>} : vector<8x16xf32>, vector<16x16xf32>, vector<8x16xf32> -> vector<8x16xf32>
    %6 = vector.broadcast %4 : vector<1x16xf32> to vector<8x16xf32>
    %7 = arith.addf %5, %6 : vector<8x16xf32>
    %cst_7 = arith.constant 0.000000e+00 : f32
    %8 = vector.broadcast %cst_7 : f32 to vector<8x16xf32>
    %9 = arith.maximumf %7, %8 : vector<8x16xf32>
    %c1 = arith.constant 1 : index
    %c0_8 = arith.constant 0 : index
    %c0_9 = arith.constant 0 : index
    %10 = vector.load %arg2[%c1, %c0_8, %c0_9] : memref<4x16x16xf32, #tpu.memory_space<vmem>>, vector<1x16x16xf32>
    %11 = vector.shape_cast %10 : vector<1x16x16xf32> to vector<16x16xf32>
    %c1_10 = arith.constant 1 : index
    %c0_11 = arith.constant 0 : index
    %c0_12 = arith.constant 0 : index
    %12 = vector.load %arg3[%c1_10, %c0_11, %c0_12] : memref<4x1x16xf32, #tpu.memory_space<vmem>>, vector<1x1x16xf32>
    %13 = vector.shape_cast %12 : vector<1x1x16xf32> to vector<1x16xf32>
    %cst_13 = arith.constant dense<0.000000e+00> : vector<8x16xf32>
    %14 = tpu.matmul %9, %11, %cst_13 {dimension_numbers = #tpu.dot_dimension_numbers<[1], [0], [0], [1], [0, 0, 1, 1], [], []>} : vector<8x16xf32>, vector<16x16xf32>, vector<8x16xf32> -> vector<8x16xf32>
    %15 = vector.broadcast %13 : vector<1x16xf32> to vector<8x16xf32>
    %16 = arith.addf %14, %15 : vector<8x16xf32>
    %cst_14 = arith.constant 0.000000e+00 : f32
    %17 = vector.broadcast %cst_14 : f32 to vector<8x16xf32>
    %18 = arith.maximumf %16, %17 : vector<8x16xf32>
    %c2 = arith.constant 2 : index
    %c0_15 = arith.constant 0 : index
    %c0_16 = arith.constant 0 : index
    %19 = vector.load %arg2[%c2, %c0_15, %c0_16] : memref<4x16x16xf32, #tpu.memory_space<vmem>>, vector<1x16x16xf32>
    %20 = vector.shape_cast %19 : vector<1x16x16xf32> to vector<16x16xf32>
    %c2_17 = arith.constant 2 : index
    %c0_18 = arith.constant 0 : index
    %c0_19 = arith.constant 0 : index
    %21 = vector.load %arg3[%c2_17, %c0_18, %c0_19] : memref<4x1x16xf32, #tpu.memory_space<vmem>>, vector<1x1x16xf32>
    %22 = vector.shape_cast %21 : vector<1x1x16xf32> to vector<1x16xf32>
    %cst_20 = arith.constant dense<0.000000e+00> : vector<8x16xf32>
    %23 = tpu.matmul %18, %20, %cst_20 {dimension_numbers = #tpu.dot_dimension_numbers<[1], [0], [0], [1], [0, 0, 1, 1], [], []>} : vector<8x16xf32>, vector<16x16xf32>, vector<8x16xf32> -> vector<8x16xf32>
    %24 = vector.broadcast %22 : vector<1x16xf32> to vector<8x16xf32>
    %25 = arith.addf %23, %24 : vector<8x16xf32>
    %cst_21 = arith.constant 0.000000e+00 : f32
    %26 = vector.broadcast %cst_21 : f32 to vector<8x16xf32>
    %27 = arith.maximumf %25, %26 : vector<8x16xf32>
    %c3 = arith.constant 3 : index
    %c0_22 = arith.constant 0 : index
    %c0_23 = arith.constant 0 : index
    %28 = vector.load %arg2[%c3, %c0_22, %c0_23] : memref<4x16x16xf32, #tpu.memory_space<vmem>>, vector<1x16x16xf32>
    %29 = vector.shape_cast %28 : vector<1x16x16xf32> to vector<16x16xf32>
    %c3_24 = arith.constant 3 : index
    %c0_25 = arith.constant 0 : index
    %c0_26 = arith.constant 0 : index
    %30 = vector.load %arg3[%c3_24, %c0_25, %c0_26] : memref<4x1x16xf32, #tpu.memory_space<vmem>>, vector<1x1x16xf32>
    %31 = vector.shape_cast %30 : vector<1x1x16xf32> to vector<1x16xf32>
    %cst_27 = arith.constant dense<0.000000e+00> : vector<8x16xf32>
    %32 = tpu.matmul %27, %29, %cst_27 {dimension_numbers = #tpu.dot_dimension_numbers<[1], [0], [0], [1], [0, 0, 1, 1], [], []>} : vector<8x16xf32>, vector<16x16xf32>, vector<8x16xf32> -> vector<8x16xf32>
    %33 = vector.broadcast %31 : vector<1x16xf32> to vector<8x16xf32>
    %34 = arith.addf %32, %33 : vector<8x16xf32>
    %cst_28 = arith.constant 0.000000e+00 : f32
    %35 = vector.broadcast %cst_28 : f32 to vector<8x16xf32>
    %36 = arith.maximumf %34, %35 : vector<8x16xf32>
    %c0_29 = arith.constant 0 : index
    %c0_30 = arith.constant 0 : index
    %37 = vector.load %arg4[%c0_29, %c0_30] : memref<16x8xf32, #tpu.memory_space<vmem>>, vector<16x8xf32>
    %cst_31 = arith.constant dense<0.000000e+00> : vector<8x8xf32>
    %38 = tpu.matmul %36, %37, %cst_31 {dimension_numbers = #tpu.dot_dimension_numbers<[1], [0], [0], [1], [0, 0, 1, 1], [], []>} : vector<8x16xf32>, vector<16x8xf32>, vector<8x8xf32> -> vector<8x8xf32>
    %c0_32 = arith.constant 0 : index
    %c0_33 = arith.constant 0 : index
    %39 = vector.load %arg5[%c0_32, %c0_33] : memref<1x8xf32, #tpu.memory_space<vmem>>, vector<1x8xf32>
    %40 = vector.broadcast %39 : vector<1x8xf32> to vector<8x8xf32>
    %41 = arith.addf %38, %40 : vector<8x8xf32>
    %c0_34 = arith.constant 0 : index
    %c0_35 = arith.constant 0 : index
    %42 = vector.load %arg6[%c0_34, %c0_35] : memref<8x8xf32, #tpu.memory_space<vmem>>, vector<8x8xf32>
    tpu.vector_store %arg6[%c0_34, %c0_35], %41 {strides = array<i32>} : memref<8x8xf32, #tpu.memory_space<vmem>>, vector<8x8xf32>,
    return
  }
  func.func @transform_0(%arg0: i32) -> (i32, i32) {
    %c0_i32 = arith.constant 0 : i32
    %c0_i32_0 = arith.constant 0 : i32
    return %arg0, %c0_i32 : i32, i32
  }
  func.func @transform_1(%arg0: i32) -> (i32, i32, i32) {
    %c0_i32 = arith.constant 0 : i32
    %c0_i32_0 = arith.constant 0 : i32
    %c0_i32_1 = arith.constant 0 : i32
    %c0_i32_2 = arith.constant 0 : i32
    return %c0_i32, %c0_i32_0, %c0_i32_1 : i32, i32, i32
  }
  func.func @transform_2(%arg0: i32) -> (i32, i32, i32) {
    %c0_i32 = arith.constant 0 : i32
    %c0_i32_0 = arith.constant 0 : i32
    %c0_i32_1 = arith.constant 0 : i32
    %c0_i32_2 = arith.constant 0 : i32
    return %c0_i32, %c0_i32_0, %c0_i32_1 : i32, i32, i32
  }
  func.func @transform_3(%arg0: i32) -> (i32, i32) {
    %c0_i32 = arith.constant 0 : i32
    %c0_i32_0 = arith.constant 0 : i32
    %c0_i32_1 = arith.constant 0 : i32
    return %c0_i32, %c0_i32_0 : i32, i32
  }
  func.func @transform_4(%arg0: i32) -> (i32, i32) {
    %c0_i32 = arith.constant 0 : i32
    %c0_i32_0 = arith.constant 0 : i32
    %c0_i32_1 = arith.constant 0 : i32
    return %c0_i32, %c0_i32_0 : i32, i32
  }
  func.func @transform_5(%arg0: i32) -> (i32, i32) {
    %c0_i32 = arith.constant 0 : i32
    %c0_i32_0 = arith.constant 0 : i32
    return %arg0, %c0_i32 : i32, i32
  }
}

</mosaic_0001>

<bundles_post_ra>
// kernel: tpu_custom_call.1
= control target key start
LH: loop header
LB: loop body
LE: loop exit
PB: predicated region body
PF: predicated region fallthrough
CT: control target
= control target key end

     0   :  { %10 = vsyncpa [#allocation3], 0  ;;  %s351_s0 = inlined_call_operand.vmem [shape: f32[8,16], index: 0, kind: input, shape index: {}]   ;;  %s352_s1 = inlined_call_operand.hbm [shape: f32[4,16,16], index: 1, kind: input, shape index: {}]   ;;  %s353_s2 = inlined_call_operand.vmem [shape: f32[4,1,16], index: 2, kind: input, shape index: {}]   ;;  %s354_s3 = inlined_call_operand.vmem [shape: f32[16,8], index: 3, kind: input, shape index: {}]   ;;  %s355_s4 = inlined_call_operand.vmem [shape: f32[1,8], index: 4, kind: input, shape index: {}]   ;;  %s356_s5 = inlined_call_operand.hbm [shape: f32[8,8], index: 5, kind: output, shape index: {}]  }
   0x1   :  { %11 = vsyncpa [#allocation4], 0  ;;  %s18_s20 = sshll.u32 %s352_s1, 4  ;;  %s282_s21 = smov [#allocation2]   ;;  %s19_s20 = int_to_ptr.hbm [resolvable:$true] %s18_s20 }
   0x2   :  { %s20_s22 = sshll.u32 %s282_s21, 4  ;;  %s283_s23 = smov 128   ;;  %s21_s22 = int_to_ptr.vmem [resolvable:$true] %s20_s22 }
   0x3   :  { %s284_s24 = smov 8  }
   0x4   :  { %26 = dma.hbm_to_vmem [thread:$0]  %s19_s20, 1024, %s21_s22, [#allocation3], %s283_s23, %s283_s23, %s284_s24  }
   0x5   :  { %278 = dma.done.wait [#allocation3], 1024  }
   0x6   :  { %279 = vsyncadd [#allocation3], 4294966272  ;;  %v39_v0 = vld [vmem:[#allocation2 + $0x8] sm:$0xff]  ;;  %v38_v1 = vld [vmem:[#allocation2] sm:$0xff]  ;;  %vm44_vm0 = vcmask 130048   ;;  %s285_s14 = smov [#allocation5]  }
   0x7   :  { %62 = vmatpush.msra.mxu0 %v39_v0  ;;  %v37_v2 = vld [vmem:[%s351_s0] sm:$0xff]  ;;  %v71_v3 = vld [vmem:[#allocation2 + $0x18] sm:$0xff]  ;;  %v70_v4 = vld [vmem:[#allocation2 + $0x10] sm:$0xff]  ;;  %s201_s15 = sshll.u32 %s285_s14, 4  ;;  %vm194_vm1 = vcmask 64512   ;;  %s202_s15 = int_to_ptr.vmem [resolvable:$true] %s201_s15 }
   0x8   :  { %94 = vmatpush.msra.mxu1 %v71_v3  ;;  %v225_v5 = vld [vmem:[%s353_s2] ss:$0 sm:$0xff]  ;;  %v103_v9 = vld [vmem:[#allocation2 + $0x28] sm:$0xff]  ;;  %v226_v11 = vld [vmem:[%s353_s2 + $0x1] ss:$0 sm:$0xff] }
   0x9   :  { %63 = vmatpush.msra.mxu0 %v38_v1  ;;  %126 = vmatpush.msra.mxu2 %v103_v9  ;;  %v102_v10 = vld [vmem:[#allocation2 + $0x20] sm:$0xff]  ;;  %v135_v15 = vld [vmem:[#allocation2 + $0x38] sm:$0xff]  ;;  %v134_v16 = vld [vmem:[#allocation2 + $0x30] sm:$0xff] }
   0xa   :  { %213 = vmatmul.msk.f32.vlgmr.msra.gmra.mxu0 %vm44_vm0, %v37_v2  ;;  %95 = vmatpush.msra.mxu1 %v70_v4  ;;  %v166_v17 = vld [vmem:[%s354_s3 + $0x8] sm:$0xff]  ;;  %v227_v18 = vld [vmem:[%s353_s2 + $0x2] ss:$0 sm:$0xff]  ;;  %v228_v23 = vld [vmem:[%s353_s2 + $0x3] ss:$0 sm:$0xff] }
   0xb   :  { %127 = vmatpush.msra.mxu2 %v102_v10  ;;  %158 = vmatpush.msra.mxu3 %v135_v15  ;;  %v165_v22 = vld [vmem:[%s354_s3] sm:$0xff]  ;;  %s203_s3 = sshll.u32 %s356_s5, 4  ;;  %s204_s3 = int_to_ptr.hbm [resolvable:$true] %s203_s3 }
   0xc   :  { %188 = vmatpush.msrb.mxu0 %v166_v17  ;;  %v229_v27 = vld [vmem:[%s355_s4] ss:$0 sm:$0xff] }
   0xd   :  { %159 = vmatpush.msra.mxu3 %v134_v16 }
   0xe   :  { %189 = vmatpush.msrb.mxu0 %v165_v22 }
  0x87   :  { %v65_v6 = vpop.f32.mrf.mxu0 }
  0x88   :  { %v66_v7 = vadd.f32 %v225_v5, %v65_v6 }
  0x8a   :  { %v68_v8 = vmax.f32 %v66_v7, 0.0 }
  0x8c   :  { %215 = vmatmul.msk.f32.vlgmr.msra.gmra.mxu1 %vm44_vm0, %v68_v8 }
 0x109   :  { %v97_v12 = vpop.f32.mrf.mxu1 }
 0x10a   :  { %v98_v13 = vadd.f32 %v226_v11, %v97_v12 }
 0x10c   :  { %v100_v14 = vmax.f32 %v98_v13, 0.0 }
 0x10e   :  { %217 = vmatmul.msk.f32.vlgmr.msra.gmra.mxu2 %vm44_vm0, %v100_v14 }
 0x191   :  { %v129_v19 = vpop.f32.mrf.mxu2 }
 0x192   :  { %v130_v20 = vadd.f32 %v227_v18, %v129_v19 }
 0x194   :  { %v132_v21 = vmax.f32 %v130_v20, 0.0 }
 0x196   :  { %219 = vmatmul.msk.f32.vlgmr.msra.gmra.mxu3 %vm44_vm0, %v132_v21 }
 0x219   :  { %v161_v24 = vpop.f32.mrf.mxu3 }
 0x21a   :  { %v162_v25 = vadd.f32 %v228_v23, %v161_v24 }
 0x21c   :  { %v164_v26 = vmax.f32 %v162_v25, 0.0 }
 0x21e   :  { %220 = vmatmul.msk.f32.vlgmr.msrb.gmra.mxu0 %vm44_vm0, %v164_v26 }
 0x29b   :  { %v191_v28 = vpop.f32.mrf.mxu0 }
 0x29c   :  { %v192_v29 = vadd.f32 %v229_v27, %v191_v28 }
 0x29e   :  { %195 = vst.msk [vmem:[#allocation5] sm:$0xff] %vm194_vm1, %v192_v29 }
 0x29f   :  { %206 = dma.vmem_to_hbm [thread:$0]  %s202_s15, 128, %s204_s3, [#allocation4]  }
 0x2a0   :  { %280 = dma.done.wait [#allocation4], 128  }
 0x2a1   :  { %281 = vsyncadd [#allocation4], 4294967168 }
 0x2a2   :  { %211 = vsyncpa [#allocation3], 1 }
 0x2a3   :  { %212 = vsyncpa [#allocation4], 1 }

</bundles_post_ra>
